<compile_context>
chip_gen: v6e
topology: v6e:2x2x1
jax: 0.10.0
libtpu: 0.0.40
codegen_flags: <defaults>
</compile_context>

<pallas_src>
import functools

import jax
import jax.numpy as jnp
from jax.experimental import pallas as pl
from jax.experimental.pallas import tpu as pltpu


def actor_att_kernel(x_ref, w1_ref, b1_ref, segsum_ref, w3_ref, b3_ref, o_ref,
                     *, approx_reciprocal):
    x = x_ref[...]                           # (bm, Sp) f32 or bf16, packed rows
    xf = x.astype(jnp.float32)

    # fc1 (block-diagonal when rows are packed): MXU, f32 accumulate.
    h = jnp.dot(x, w1_ref[...], preferred_element_type=jnp.float32) + b1_ref[...]

    # Softmax over each logical row.  Shift by the per-(packed)-row max:
    # softmax is shift-invariant, so each 32-lane segment's result is exact,
    # and exp arguments stay <= 0 (overflow-safe).
    h = h - jnp.max(h, axis=-1, keepdims=True)
    e = jnp.exp(h)                                       # EUP
    # Per-segment sums broadcast back to every lane of the segment with one
    # small MXU matmul against block_diag(ones(S,S)) -- avoids any
    # lane->sublane relayout for the segmented reduction.
    denom = jnp.dot(e, segsum_ref[...], preferred_element_type=jnp.float32)
    if approx_reciprocal:
        sm = e * pl.reciprocal(denom, approx=True)       # EUP vrcp
    else:
        sm = e / denom

    out1 = xf * sm                                       # attention gate (VPU, f32)

    # fc3 (block-diagonal when packed): MXU, f32 accumulate.
    y = jnp.dot(out1.astype(w3_ref.dtype), w3_ref[...],
                preferred_element_type=jnp.float32) + b3_ref[...]

    # sigmoid(y) == 0.5*(tanh(y/2)+1) -> EUP tanh instead of a VPU divide.
    o_ref[...] = 0.5 * (jnp.tanh(0.5 * y) + 1.0)


def _round_up(v, m):
    return (v + m - 1) // m * m


def actor_net_att_forward(x, w1, b1, w3, b3, *, bm=None, pack=None,
                          approx_reciprocal=True):
    """x: (B, S); w1: (S, S); b1: (S,)/(1,S); w3: (S, A); b3: (A,)/(1,A).

    Weights are (in_features, out_features).  Returns (B, A) float32.
    `pack` logical rows are packed side by side into one 128-lane row
    (default: 128 // S).  x is consumed in its given dtype (f32 or bf16);
    only the tiny resident weights are cast to match it.
    """
    B, S = x.shape
    A = w3.shape[1]
    x_itemsize = jnp.dtype(x.dtype).itemsize
    sublane = 16 if x_itemsize == 2 else 8

    # ---- row packing (free byte-level reshape; weights become block-diag).
    if pack is None:
        pack = max(1, 128 // S)
    Sp, Ap = S * pack, A * pack

    w1p = jnp.kron(jnp.eye(pack, dtype=jnp.float32),
                   w1.astype(jnp.float32)).astype(x.dtype)
    w3p = jnp.kron(jnp.eye(pack, dtype=jnp.float32),
                   w3.astype(jnp.float32)).astype(x.dtype)
    segsum = jnp.kron(jnp.eye(pack, dtype=jnp.float32),
                      jnp.ones((S, S), jnp.float32))
    b1p = jnp.tile(b1.astype(jnp.float32).reshape(1, S), (1, pack))
    b3p = jnp.tile(b3.astype(jnp.float32).reshape(1, A), (1, pack))

    # ---- batch tile (in packed rows): sized by x BYTES per grid step
    # (~1 MiB) so the ~0.35us fixed step cost is amortized; never force extra
    # steps for small batches.  Clamp with a lane-padded VMEM estimate
    # (every (bm, <=128) f32 buffer occupies 128 lanes in VMEM).
    n_rows = pl.cdiv(B, pack)                    # packed rows actually needed
    if bm is None:
        target_x_bytes = 1 << 20
        bm = max(sublane, target_x_bytes // (Sp * x_itemsize))
    lane = 128
    per_row_vmem = (2 * _round_up(Sp, lane) * x_itemsize     # x tile, dbl-buffered
                    + 6 * _round_up(Sp, lane) * 4            # f32 temporaries
                    + 2 * _round_up(Ap, lane) * 4)           # out tile, dbl-buffered
    vmem_budget = 24 << 20                                   # headroom below limit
    bm = min(bm, max(sublane, vmem_budget // per_row_vmem))
    bm = _round_up(min(bm, max(n_rows, sublane)), sublane)

    n_rows_p = _round_up(n_rows, bm)
    pad_rows = n_rows_p * pack - B
    if pad_rows:
        x = jnp.pad(x, ((0, pad_rows), (0, 0)))              # zero rows: benign
    xp = x.reshape(n_rows_p, Sp)                 # free: identical row-major bytes

    grid = (n_rows_p // bm,)

    cost = pl.CostEstimate(
        flops=2 * n_rows_p * (2 * Sp * Sp + Sp * Ap),
        transcendentals=n_rows_p * (Sp + Ap),
        bytes_accessed=(x_itemsize * (n_rows_p * Sp + 2 * Sp * Sp + Sp * Ap)
                        + 4 * (Sp + Ap + n_rows_p * Ap)),
    )

    kernel = functools.partial(actor_att_kernel,
                               approx_reciprocal=approx_reciprocal)

    out = pl.pallas_call(
        kernel,
        out_shape=jax.ShapeDtypeStruct((n_rows_p, Ap), jnp.float32),
        grid=grid,
        in_specs=[
            pl.BlockSpec((bm, Sp), lambda i: (i, 0)),   # x tile over batch
            pl.BlockSpec((Sp, Sp), lambda i: (0, 0)),   # block-diag W1 (resident)
            pl.BlockSpec((1, Sp), lambda i: (0, 0)),    # b1 (resident)
            pl.BlockSpec((Sp, Sp), lambda i: (0, 0)),   # segment-sum ones (resident)
            pl.BlockSpec((Sp, Ap), lambda i: (0, 0)),   # block-diag W3 (resident)
            pl.BlockSpec((1, Ap), lambda i: (0, 0)),    # b3 (resident)
        ],
        out_specs=pl.BlockSpec((bm, Ap), lambda i: (i, 0)),
        compiler_params=pltpu.CompilerParams(
            dimension_semantics=("parallel",),
            vmem_limit_bytes=32 << 20),
        cost_estimate=cost,
    )(xp, w1p, b1p, segsum, w3p, b3p)

    # (n_rows_p, pack*A) is byte-identical to (n_rows_p*pack, A) row-major.
    return out.reshape(n_rows_p * pack, A)[:B]


def reference_forward(x, w1, b1, w3, b3):
    h = x.astype(jnp.float32) @ w1 + b1.reshape(1, -1)
    sm = jax.nn.softmax(h, axis=1)
    out1 = x.astype(jnp.float32) * sm
    return jax.nn.sigmoid(out1 @ w3 + b3.reshape(1, -1))


if __name__ == "__main__":
    state_dim, action_dim = 32, 8

    key = jax.random.PRNGKey(0)
    kx, kw1, kb1, kw3, kb3, kx2, kx3 = jax.random.split(key, 7)

    # Parameter init mirroring the PyTorch module:
    #   weight ~ N(0, 0.1); bias ~ N(0.1, 1.0)   (bias.data.normal_(0.1))
    w1 = 0.1 * jax.random.normal(kw1, (state_dim, state_dim), dtype=jnp.float32)
    b1 = 0.1 + jax.random.normal(kb1, (state_dim,), dtype=jnp.float32)
    w3 = 0.1 * jax.random.normal(kw3, (state_dim, action_dim), dtype=jnp.float32)
    b3 = 0.1 + jax.random.normal(kb3, (action_dim,), dtype=jnp.float32)

    # Case 1: small batch, single grid step, packed (pack=4), f32.
    batch = 8
    x = jax.random.normal(kx, (batch, state_dim), dtype=jnp.float32)
    out = actor_net_att_forward(x, w1, b1, w3, b3)
    jax.block_until_ready(out)
    ref = reference_forward(x, w1, b1, w3, b3)
    assert out.shape == (batch, action_dim)
    assert jnp.allclose(out, ref, atol=3e-3, rtol=3e-3), "mismatch (f32, grid=1)"

    # Case 2: non-divisible batch -> zero padding, still one grid step.
    batch2 = 20
    x2 = jax.random.normal(kx2, (batch2, state_dim), dtype=jnp.float32)
    out2 = actor_net_att_forward(x2, w1, b1, w3, b3)
    jax.block_until_ready(out2)
    ref2 = reference_forward(x2, w1, b1, w3, b3)
    assert out2.shape == (batch2, action_dim)
    assert jnp.allclose(out2, ref2, atol=3e-3, rtol=3e-3), "mismatch (f32, padded)"

    # Case 3: multi-step grid (explicit small bm) + exact-reciprocal softmax.
    batch3 = 600
    x3 = jax.random.normal(kx3, (batch3, state_dim), dtype=jnp.float32)
    out3 = actor_net_att_forward(x3, w1, b1, w3, b3, bm=64,
                                 approx_reciprocal=False)
    jax.block_until_ready(out3)
    ref3 = reference_forward(x3, w1, b1, w3, b3)
    assert out3.shape == (batch3, action_dim)
    assert jnp.allclose(out3, ref3, atol=2e-5, rtol=2e-5), "mismatch (f32, grid>1)"

    # Case 4: unpacked fallback path (pack=1).
    out4 = actor_net_att_forward(x2, w1, b1, w3, b3, pack=1)
    jax.block_until_ready(out4)
    assert out4.shape == (batch2, action_dim)
    assert jnp.allclose(out4, ref2, atol=3e-3, rtol=3e-3), "mismatch (pack=1)"

    # Case 5: caller-provided bf16 x (no wrapper cast; 16-sublane tiling).
    x5 = x2.astype(jnp.bfloat16)
    out5 = actor_net_att_forward(x5, w1, b1, w3, b3)
    jax.block_until_ready(out5)
    assert out5.shape == (batch2, action_dim)
    assert jnp.allclose(out5, ref2, atol=5e-2, rtol=5e-2), "mismatch (bf16 x)"

    print("KERNEL_OK")
</pallas_src>

<mosaic_0001>
module attributes {stable_mosaic.version = 11 : i64} {
  func.func @actor_att_kernel(%arg0: i32, %arg1: memref<8x128xf32, #tpu.memory_space<vmem>>, %arg2: memref<128x128xf32, #tpu.memory_space<vmem>>, %arg3: memref<1x128xf32, #tpu.memory_space<vmem>>, %arg4: memref<128x128xf32, #tpu.memory_space<vmem>>, %arg5: memref<128x32xf32, #tpu.memory_space<vmem>>, %arg6: memref<1x32xf32, #tpu.memory_space<vmem>>, %arg7: memref<8x32xf32, #tpu.memory_space<vmem>>) attributes {dimension_semantics = [#tpu.dimension_semantics<parallel>], iteration_bounds = array<i64: 1>, scalar_prefetch = 0 : i64, scratch_operands = 0 : i64, tpu.core_type = #tpu.core_type<tc>, window_params = [{transform_indices = @transform_0, window_bounds = array<i64: 8, 128>}, {pipeline_mode = #tpu.pipeline_mode<synchronous>, transform_indices = @transform_1, window_bounds = array<i64: 128, 128>}, {pipeline_mode = #tpu.pipeline_mode<synchronous>, transform_indices = @transform_2, window_bounds = array<i64: 1, 128>}, {pipeline_mode = #tpu.pipeline_mode<synchronous>, transform_indices = @transform_3, window_bounds = array<i64: 128, 128>}, {pipeline_mode = #tpu.pipeline_mode<synchronous>, transform_indices = @transform_4, window_bounds = array<i64: 128, 32>}, {pipeline_mode = #tpu.pipeline_mode<synchronous>, transform_indices = @transform_5, window_bounds = array<i64: 1, 32>}, {transform_indices = @transform_6, window_bounds = array<i64: 8, 32>}]} {
    %c0 = arith.constant 0 : index
    %c0_0 = arith.constant 0 : index
    %0 = vector.load %arg1[%c0, %c0_0] : memref<8x128xf32, #tpu.memory_space<vmem>>, vector<8x128xf32>
    %c0_1 = arith.constant 0 : index
    %c0_2 = arith.constant 0 : index
    %1 = vector.load %arg2[%c0_1, %c0_2] : memref<128x128xf32, #tpu.memory_space<vmem>>, vector<128x128xf32>
    %cst = arith.constant dense<0.000000e+00> : vector<8x128xf32>
    %2 = tpu.matmul %0, %1, %cst {dimension_numbers = #tpu.dot_dimension_numbers<[1], [0], [0], [1], [0, 0, 1, 1], [], []>} : vector<8x128xf32>, vector<128x128xf32>, vector<8x128xf32> -> vector<8x128xf32>
    %c0_3 = arith.constant 0 : index
    %c0_4 = arith.constant 0 : index
    %3 = vector.load %arg3[%c0_3, %c0_4] : memref<1x128xf32, #tpu.memory_space<vmem>>, vector<1x128xf32>
    %4 = vector.broadcast %3 : vector<1x128xf32> to vector<8x128xf32>
    %5 = arith.addf %2, %4 : vector<8x128xf32>
    %cst_5 = arith.constant dense<0xFF800000> : vector<8xf32>
    %6 = vector.multi_reduction <maximumf>, %5, %cst_5 [1] : vector<8x128xf32> to vector<8xf32>
    %7 = vector.shape_cast %6 : vector<8xf32> to vector<8x1xf32>
    %8 = vector.broadcast %7 : vector<8x1xf32> to vector<8x128xf32>
    %9 = arith.subf %5, %8 : vector<8x128xf32>
    %10 = math.exp %9 : vector<8x128xf32>
    %c0_6 = arith.constant 0 : index
    %c0_7 = arith.constant 0 : index
    %11 = vector.load %arg4[%c0_6, %c0_7] : memref<128x128xf32, #tpu.memory_space<vmem>>, vector<128x128xf32>
    %cst_8 = arith.constant dense<0.000000e+00> : vector<8x128xf32>
    %12 = tpu.matmul %10, %11, %cst_8 {dimension_numbers = #tpu.dot_dimension_numbers<[1], [0], [0], [1], [0, 0, 1, 1], [], []>} : vector<8x128xf32>, vector<128x128xf32>, vector<8x128xf32> -> vector<8x128xf32>
    %13 = tpu.reciprocal %12 {approx = true} : vector<8x128xf32> -> vector<8x128xf32>
    %14 = arith.mulf %10, %13 : vector<8x128xf32>
    %15 = arith.mulf %0, %14 : vector<8x128xf32>
    %c0_9 = arith.constant 0 : index
    %c0_10 = arith.constant 0 : index
    %16 = vector.load %arg5[%c0_9, %c0_10] : memref<128x32xf32, #tpu.memory_space<vmem>>, vector<128x32xf32>
    %cst_11 = arith.constant dense<0.000000e+00> : vector<8x32xf32>
    %17 = tpu.matmul %15, %16, %cst_11 {dimension_numbers = #tpu.dot_dimension_numbers<[1], [0], [0], [1], [0, 0, 1, 1], [], []>} : vector<8x128xf32>, vector<128x32xf32>, vector<8x32xf32> -> vector<8x32xf32>
    %c0_12 = arith.constant 0 : index
    %c0_13 = arith.constant 0 : index
    %18 = vector.load %arg6[%c0_12, %c0_13] : memref<1x32xf32, #tpu.memory_space<vmem>>, vector<1x32xf32>
    %19 = vector.broadcast %18 : vector<1x32xf32> to vector<8x32xf32>
    %20 = arith.addf %17, %19 : vector<8x32xf32>
    %cst_14 = arith.constant 5.000000e-01 : f32
    %21 = vector.broadcast %cst_14 : f32 to vector<8x32xf32>
    %22 = arith.mulf %21, %20 : vector<8x32xf32>
    %23 = math.tanh %22 : vector<8x32xf32>
    %cst_15 = arith.constant 1.000000e+00 : f32
    %24 = vector.broadcast %cst_15 : f32 to vector<8x32xf32>
    %25 = arith.addf %23, %24 : vector<8x32xf32>
    %cst_16 = arith.constant 5.000000e-01 : f32
    %26 = vector.broadcast %cst_16 : f32 to vector<8x32xf32>
    %27 = arith.mulf %26, %25 : vector<8x32xf32>
    %c0_17 = arith.constant 0 : index
    %c0_18 = arith.constant 0 : index
    %28 = vector.load %arg7[%c0_17, %c0_18] : memref<8x32xf32, #tpu.memory_space<vmem>>, vector<8x32xf32>
    tpu.vector_store %arg7[%c0_17, %c0_18], %27 {strides = array<i32>} : memref<8x32xf32, #tpu.memory_space<vmem>>, vector<8x32xf32>,
    return
  }
  func.func @transform_0(%arg0: i32) -> (i32, i32) {
    %c0_i32 = arith.constant 0 : i32
    %c0_i32_0 = arith.constant 0 : i32
    return %arg0, %c0_i32 : i32, i32
  }
  func.func @transform_1(%arg0: i32) -> (i32, i32) {
    %c0_i32 = arith.constant 0 : i32
    %c0_i32_0 = arith.constant 0 : i32
    %c0_i32_1 = arith.constant 0 : i32
    return %c0_i32, %c0_i32_0 : i32, i32
  }
  func.func @transform_2(%arg0: i32) -> (i32, i32) {
    %c0_i32 = arith.constant 0 : i32
    %c0_i32_0 = arith.constant 0 : i32
    %c0_i32_1 = arith.constant 0 : i32
    return %c0_i32, %c0_i32_0 : i32, i32
  }
  func.func @transform_3(%arg0: i32) -> (i32, i32) {
    %c0_i32 = arith.constant 0 : i32
    %c0_i32_0 = arith.constant 0 : i32
    %c0_i32_1 = arith.constant 0 : i32
    return %c0_i32, %c0_i32_0 : i32, i32
  }
  func.func @transform_4(%arg0: i32) -> (i32, i32) {
    %c0_i32 = arith.constant 0 : i32
    %c0_i32_0 = arith.constant 0 : i32
    %c0_i32_1 = arith.constant 0 : i32
    return %c0_i32, %c0_i32_0 : i32, i32
  }
  func.func @transform_5(%arg0: i32) -> (i32, i32) {
    %c0_i32 = arith.constant 0 : i32
    %c0_i32_0 = arith.constant 0 : i32
    %c0_i32_1 = arith.constant 0 : i32
    return %c0_i32, %c0_i32_0 : i32, i32
  }
  func.func @transform_6(%arg0: i32) -> (i32, i32) {
    %c0_i32 = arith.constant 0 : i32
    %c0_i32_0 = arith.constant 0 : i32
    return %arg0, %c0_i32 : i32, i32
  }
}

</mosaic_0001>

<bundles_post_ra>
// kernel: tpu_custom_call.1
= control target key start
LH: loop header
LB: loop body
LE: loop exit
PB: predicated region body
PF: predicated region fallthrough
CT: control target
= control target key end

     0   :  { %11 = vsyncpa [#allocation3], 0  ;;  %s764_s0 = inlined_call_operand.vmem [shape: f32[8,128], index: 0, kind: input, shape index: {}]   ;;  %s765_s1 = inlined_call_operand.vmem [shape: f32[128,128], index: 1, kind: input, shape index: {}]   ;;  %s766_s2 = inlined_call_operand.vmem [shape: f32[1,128], index: 2, kind: input, shape index: {}]   ;;  %s767_s3 = inlined_call_operand.hbm [shape: f32[128,128], index: 3, kind: input, shape index: {}]   ;;  %s768_s4 = inlined_call_operand.vmem [shape: f32[128,32], index: 4, kind: input, shape index: {}]   ;;  %s769_s5 = inlined_call_operand.vmem [shape: f32[1,32], index: 5, kind: input, shape index: {}]   ;;  %s770_s6 = inlined_call_operand.hbm [shape: f32[8,32], index: 6, kind: output, shape index: {}]  }
   0x1   :  { %12 = vsyncpa [#allocation4], 0  ;;  %s554_s21 = smov [#allocation2]  }
   0x2   :  { %s24_s22 = sshll.u32 %s554_s21, 4  ;;  %s25_s22 = int_to_ptr.vmem [resolvable:$true] %s24_s22 }
   0x3   :  { %s518_s23 = scalar_lea.vmem %s25_s22, 2048  ;;  %p523_p1 = scmp.lt.s32.totalorder %s25_s22, %s25_s22 }
   0x4   :  { %p519_p0 = scmp.ne.s32.totalorder %s25_s22, %s518_s23  ;;  %p524_p2 = scmp.lt.s32.totalorder %s518_s23, %s518_s23 }
   0x6   :  { %p525_p3 = por %p524_p2, %p523_p1 }
   0x8   :  { %p526_p4 = pnand %p525_p3, %p519_p0 }
   0xa   :  { %529 = shalt.err (!%p526_p4)
}
   0xb   :  { %s555_s24 = smov 128   ;;  %s556_s25 = smov 8  }
   0xc   :  { %30 = dma.hbm_to_vmem [thread:$0]  %s767_s3, 2048, %s25_s22, [#allocation3], %s555_s24, %s555_s24, %s556_s25  }
   0xd   :  { %550 = dma.done.wait [#allocation3], 2048  }
   0xe   :  { %551 = vsyncadd [#allocation3], 4294965248  ;;  %v557_v0 = vmov 0.0   ;;  %vm558_vm0 = vmmov 0   ;;  %v54_v1 = vld [vmem:[%s765_s1 + $0x78] sm:$0xff]  ;;  %v53_v2 = vld [vmem:[%s765_s1 + $0x70] sm:$0xff] }
   0xf   :  { %393 = vmatprep.subr.mxu0 %v557_v0  ;;  %425 = vmatprep.mubr.msk.f32.mxu0 %vm558_vm0, %v557_v0  ;;  %v52_v3 = vld [vmem:[%s765_s1 + $0x68] sm:$0xff]  ;;  %v51_v4 = vld [vmem:[%s765_s1 + $0x60] sm:$0xff]  ;;  %v50_v5 = vld [vmem:[%s765_s1 + $0x58] sm:$0xff]  ;;  %vm323_vm1 = vcmask 261120  }
  0x10   :  { %428 = vmatprep.subr.mxu1 %v557_v0  ;;  %460 = vmatprep.mubr.msk.f32.mxu1 %vm558_vm0, %v557_v0  ;;  %v49_v6 = vld [vmem:[%s765_s1 + $0x50] sm:$0xff]  ;;  %v48_v7 = vld [vmem:[%s765_s1 + $0x48] sm:$0xff]  ;;  %v47_v8 = vld [vmem:[%s765_s1 + $0x40] sm:$0xff] }
  0x11   :  { %394 = vmatpush3.msra.mxu0 %v54_v1  ;;  %v46_v9 = vld [vmem:[%s765_s1 + $0x38] sm:$0xff]  ;;  %v45_v10 = vld [vmem:[%s765_s1 + $0x30] sm:$0xff]  ;;  %v44_v11 = vld [vmem:[%s765_s1 + $0x28] sm:$0xff] }
  0x12   :  { %395 = vmatprep.subr.mxu0 %v557_v0  ;;  %v43_v12 = vld [vmem:[%s765_s1 + $0x20] sm:$0xff]  ;;  %v42_v13 = vld [vmem:[%s765_s1 + $0x18] sm:$0xff]  ;;  %v41_v14 = vld [vmem:[%s765_s1 + $0x10] sm:$0xff] }
  0x13   :  { %396 = vmatpush3.msra.mxu0 %v53_v2  ;;  %v40_v15 = vld [vmem:[%s765_s1 + $0x8] sm:$0xff]  ;;  %v39_v16 = vld [vmem:[%s765_s1] sm:$0xff]  ;;  %v152_v18 = vld [vmem:[#allocation2 + $0x78] sm:$0xff] }
  0x14   :  { %397 = vmatprep.subr.mxu0 %v557_v0  ;;  %v669_v17 = vld [vmem:[%s764_s0] sm:$0xff]  ;;  %v151_v19 = vld [vmem:[#allocation2 + $0x70] sm:$0xff]  ;;  %429 = vmatpush3.msra.mxu1 %v152_v18  ;;  %v150_v20 = vld [vmem:[#allocation2 + $0x68] sm:$0xff] }
  0x15   :  { %398 = vmatpush3.msra.mxu0 %v52_v3  ;;  %430 = vmatprep.subr.mxu1 %v557_v0  ;;  %v149_v21 = vld [vmem:[#allocation2 + $0x60] sm:$0xff]  ;;  %v148_v22 = vld [vmem:[#allocation2 + $0x58] sm:$0xff]  ;;  %v147_v23 = vld [vmem:[#allocation2 + $0x50] sm:$0xff] }
  0x16   :  { %399 = vmatprep.subr.mxu0 %v557_v0  ;;  %431 = vmatpush3.msra.mxu1 %v151_v19  ;;  %v340_v24 = vld [vmem:[%s766_s2] ss:$0 sm:$0xff]  ;;  %v146_v28 = vld [vmem:[#allocation2 + $0x48] sm:$0xff]  ;;  %v144_v30 = vld [vmem:[#allocation2 + $0x38] sm:$0xff] }
  0x17   :  { %400 = vmatpush3.msra.mxu0 %v51_v4  ;;  %432 = vmatprep.subr.mxu1 %v557_v0  ;;  %v145_v29 = vld [vmem:[#allocation2 + $0x40] sm:$0xff]  ;;  %v143_v31 = vld [vmem:[#allocation2 + $0x30] sm:$0xff]  ;;  %v142_v32 = vld [vmem:[#allocation2 + $0x28] sm:$0xff] }
  0x18   :  { %401 = vmatprep.subr.mxu0 %v557_v0  ;;  %433 = vmatpush3.msra.mxu1 %v150_v20  ;;  %v141_v33 = vld [vmem:[#allocation2 + $0x20] sm:$0xff]  ;;  %v140_v34 = vld [vmem:[#allocation2 + $0x18] sm:$0xff]  ;;  %v139_v35 = vld [vmem:[#allocation2 + $0x10] sm:$0xff] }
  0x19   :  { %402 = vmatpush3.msra.mxu0 %v50_v5  ;;  %434 = vmatprep.subr.mxu1 %v557_v0  ;;  %v138_v36 = vld [vmem:[#allocation2 + $0x8] sm:$0xff]  ;;  %v137_v37 = vld [vmem:[#allocation2] sm:$0xff]  ;;  %v241_v38 = vld [vmem:[%s768_s4 + $0x78] sm:$0xff] }
  0x1a   :  { %403 = vmatprep.subr.mxu0 %v557_v0  ;;  %435 = vmatpush3.msra.mxu1 %v149_v21  ;;  %v240_v39 = vld [vmem:[%s768_s4 + $0x70] sm:$0xff]  ;;  %v239_v40 = vld [vmem:[%s768_s4 + $0x68] sm:$0xff]  ;;  %v238_v41 = vld [vmem:[%s768_s4 + $0x60] sm:$0xff] }
  0x1b   :  { %404 = vmatpush3.msra.mxu0 %v49_v6  ;;  %436 = vmatprep.subr.mxu1 %v557_v0  ;;  %v237_v42 = vld [vmem:[%s768_s4 + $0x58] sm:$0xff]  ;;  %v236_v43 = vld [vmem:[%s768_s4 + $0x50] sm:$0xff]  ;;  %v235_v48 = vld [vmem:[%s768_s4 + $0x48] sm:$0xff] }
  0x1c   :  { %405 = vmatprep.subr.mxu0 %v557_v0  ;;  %437 = vmatpush3.msra.mxu1 %v148_v22  ;;  %v234_v49 = vld [vmem:[%s768_s4 + $0x40] sm:$0xff]  ;;  %v233_v50 = vld [vmem:[%s768_s4 + $0x38] sm:$0xff]  ;;  %v232_v51 = vld [vmem:[%s768_s4 + $0x30] sm:$0xff] }
  0x1d   :  { %406 = vmatpush3.msra.mxu0 %v48_v7  ;;  %438 = vmatprep.subr.mxu1 %v557_v0  ;;  %v231_v52 = vld [vmem:[%s768_s4 + $0x28] sm:$0xff]  ;;  %v230_v53 = vld [vmem:[%s768_s4 + $0x20] sm:$0xff]  ;;  %v229_v54 = vld [vmem:[%s768_s4 + $0x18] sm:$0xff] }
  0x1e   :  { %407 = vmatprep.subr.mxu0 %v557_v0  ;;  %439 = vmatpush3.msra.mxu1 %v147_v23  ;;  %v228_v55 = vld [vmem:[%s768_s4 + $0x10] sm:$0xff]  ;;  %v227_v56 = vld [vmem:[%s768_s4 + $0x8] sm:$0xff]  ;;  %v226_v57 = vld [vmem:[%s768_s4] sm:$0xff]  ;;  %s559_s4 = smov [#allocation5]  }
  0x1f   :  { %408 = vmatpush3.msra.mxu0 %v47_v8  ;;  %440 = vmatprep.subr.mxu1 %v557_v0  ;;  %v341_v63 = vld [vmem:[%s769_s5] ss:$0 sm:$0xff]  ;;  %s331_s17 = sshll.u32 %s559_s4, 4  ;;  %s332_s17 = int_to_ptr.vmem [resolvable:$true] %s331_s17 }
  0x20   :  { %409 = vmatprep.subr.mxu0 %v557_v0  ;;  %441 = vmatpush3.msra.mxu1 %v146_v28  ;;  %s530_s18 = scalar_lea.vmem %s332_s17, 128  ;;  %p535_p6 = scmp.lt.s32.totalorder %s332_s17, %s332_s17 }
  0x21   :  { %410 = vmatpush3.msra.mxu0 %v46_v9  ;;  %442 = vmatprep.subr.mxu1 %v557_v0  ;;  %p531_p5 = scmp.ne.s32.totalorder %s332_s17, %s530_s18  ;;  %p536_p7 = scmp.lt.s32.totalorder %s530_s18, %s530_s18 }
  0x22   :  { %411 = vmatprep.subr.mxu0 %v557_v0  ;;  %443 = vmatpush3.msra.mxu1 %v145_v29 }
  0x23   :  { %412 = vmatpush3.msra.mxu0 %v45_v10  ;;  %444 = vmatprep.subr.mxu1 %v557_v0  ;;  %p537_p8 = por %p536_p7, %p535_p6 }
  0x24   :  { %413 = vmatprep.subr.mxu0 %v557_v0  ;;  %445 = vmatpush3.msra.mxu1 %v144_v30 }
  0x25   :  { %414 = vmatpush3.msra.mxu0 %v44_v11  ;;  %446 = vmatprep.subr.mxu1 %v557_v0  ;;  %p538_p9 = pnand %p537_p8, %p531_p5 }
  0x26   :  { %415 = vmatprep.subr.mxu0 %v557_v0  ;;  %447 = vmatpush3.msra.mxu1 %v143_v31 }
  0x27   :  { %416 = vmatpush3.msra.mxu0 %v43_v12  ;;  %448 = vmatprep.subr.mxu1 %v557_v0 }
  0x28   :  { %417 = vmatprep.subr.mxu0 %v557_v0  ;;  %449 = vmatpush3.msra.mxu1 %v142_v32 }
  0x29   :  { %418 = vmatpush3.msra.mxu0 %v42_v13  ;;  %450 = vmatprep.subr.mxu1 %v557_v0 }
  0x2a   :  { %419 = vmatprep.subr.mxu0 %v557_v0  ;;  %451 = vmatpush3.msra.mxu1 %v141_v33 }
  0x2b   :  { %420 = vmatpush3.msra.mxu0 %v41_v14  ;;  %452 = vmatprep.subr.mxu1 %v557_v0 }
  0x2c   :  { %421 = vmatprep.subr.mxu0 %v557_v0  ;;  %453 = vmatpush3.msra.mxu1 %v140_v34 }
  0x2d   :  { %422 = vmatpush3.msra.mxu0 %v40_v15  ;;  %454 = vmatprep.subr.mxu1 %v557_v0 }
  0x2e   :  { %423 = vmatprep.subr.mxu0 %v557_v0  ;;  %455 = vmatpush3.msra.mxu1 %v139_v35 }
  0x2f   :  { %424 = vmatpush3.msra.mxu0 %v39_v16  ;;  %456 = vmatprep.subr.mxu1 %v557_v0 }
  0x30   :  { %426 = vmatmul.mubr.f32.vlgmr.msra.gmra.mxu0 %v669_v17  ;;  %463 = vmatprep.subr.mxu0 %v557_v0 }
  0x31   :  { %495 = vmatprep.mubr.msk.f32.mxu0 %vm558_vm0, %v557_v0  ;;  %457 = vmatpush3.msra.mxu1 %v138_v36 }
  0x32   :  { %458 = vmatprep.subr.mxu1 %v557_v0  ;;  %464 = vmatpush3.msra.mxu0 %v241_v38 }
  0x33   :  { %459 = vmatpush3.msra.mxu1 %v137_v37  ;;  %465 = vmatprep.subr.mxu0 %v557_v0 }
  0x34   :  { %466 = vmatpush3.msra.mxu0 %v240_v39 }
  0x35   :  { %467 = vmatprep.subr.mxu0 %v557_v0 }
  0x36   :  { %468 = vmatpush3.msra.mxu0 %v239_v40 }
  0x37   :  { %469 = vmatprep.subr.mxu0 %v557_v0 }
  0x38   :  { %470 = vmatpush3.msra.mxu0 %v238_v41 }
  0x39   :  { %471 = vmatprep.subr.mxu0 %v557_v0 }
  0x3a   :  { %472 = vmatpush3.msra.mxu0 %v237_v42 }
  0x3b   :  { %473 = vmatprep.subr.mxu0 %v557_v0 }
  0x3c   :  { %474 = vmatpush3.msra.mxu0 %v236_v43 }
  0x3d   :  { %475 = vmatprep.subr.mxu0 %v557_v0 }
  0x3e   :  { %476 = vmatpush3.msra.mxu0 %v235_v48 }
  0x3f   :  { %477 = vmatprep.subr.mxu0 %v557_v0 }
  0x40   :  { %478 = vmatpush3.msra.mxu0 %v234_v49 }
  0x41   :  { %479 = vmatprep.subr.mxu0 %v557_v0 }
  0x42   :  { %480 = vmatpush3.msra.mxu0 %v233_v50 }
  0x43   :  { %481 = vmatprep.subr.mxu0 %v557_v0 }
  0x44   :  { %482 = vmatpush3.msra.mxu0 %v232_v51 }
  0x45   :  { %483 = vmatprep.subr.mxu0 %v557_v0 }
  0x46   :  { %484 = vmatpush3.msra.mxu0 %v231_v52 }
  0x47   :  { %485 = vmatprep.subr.mxu0 %v557_v0 }
  0x48   :  { %486 = vmatpush3.msra.mxu0 %v230_v53 }
  0x49   :  { %487 = vmatprep.subr.mxu0 %v557_v0 }
  0x4a   :  { %488 = vmatpush3.msra.mxu0 %v229_v54 }
  0x4b   :  { %489 = vmatprep.subr.mxu0 %v557_v0 }
  0x4c   :  { %490 = vmatpush3.msra.mxu0 %v228_v55 }
  0x4d   :  { %491 = vmatprep.subr.mxu0 %v557_v0 }
  0x4e   :  { %492 = vmatpush3.msra.mxu0 %v227_v56 }
  0x4f   :  { %493 = vmatprep.subr.mxu0 %v557_v0 }
  0x50   :  { %494 = vmatpush3.msra.mxu0 %v226_v57 }
  0xf0   :  { %v128_v25 = vpop.f32.mrf.mxu0 }
  0xf1   :  { %v129_v26 = vadd.f32 %v340_v24, %v128_v25 }
  0xf2   :  { %v427_v27 = vpop.f32.mrf.mxu0 }
  0xf3   :  { %132 = vmax.xlane.f32.xlu0 %v129_v26 }
 0x17c   :  { %v133_v44 = vpop.xlane.xlu0 %132 }
 0x17d   :  { %v134_v45 = vsub.f32 %v129_v26, %v133_v44 }
 0x17f   :  { %v135_v46 = vmul.f32 1.442695, %v134_v45 }
 0x181   :  { %504 = vpow2.f32 %v135_v46 }
 0x18e   :  { %v505_v47 = vpop.eup %504 }
 0x18f   :  { %461 = vmatmul.mubr.f32.vlgmr.msra.gmra.mxu1 %v505_v47 }
 0x24f   :  { %v219_v58 = vpop.f32.mrf.mxu1 }
 0x250   :  { %506 = vrcp.f32 %v219_v58 }
 0x251   :  { %v462_v59 = vpop.f32.mrf.mxu1 }
 0x25d   :  { %v507_v60 = vpop.eup %506 }
 0x25e   :  { %v224_v61 = vmul.f32 %v507_v60, %v505_v47 }
 0x260   :  { %v225_v62 = vmul.f32 %v224_v61, %v669_v17 }
 0x262   :  { %496 = vmatmul.mubr.f32.vlgmr.msra.gmra.mxu0 %v225_v62 }
 0x322   :  { %v315_v1 = vpop.f32.mrf.mxu0 }
 0x323   :  { %v316_v2 = vadd.f32 %v341_v63, %v315_v1 }
 0x324   :  { %v497_v3 = vpop.f32.mrf.mxu0 }
 0x325   :  { %v319_v4 = vmul.f32 0.5, %v316_v2 }
 0x327   :  { %508 = vtanh.f32 %v319_v4 }
 0x334   :  { %v509_v5 = vpop.eup %508 }
 0x335   :  { %v321_v0 = vadd.f32 1.0, %v509_v5 }
 0x337   :  { %v322_v6 = vmul.f32 0.5, %v321_v0 }
 0x339   :  { %324 = vst.msk [vmem:[#allocation5] sm:$0xff] %vm323_vm1, %v322_v6 }
 0x33a   :  { %541 = shalt.err (!%p538_p9)
}
 0x33b   :  { %334 = dma.vmem_to_hbm [thread:$0]  %s332_s17, 128, %s770_s6, [#allocation4]  }
 0x33c   :  { %552 = dma.done.wait [#allocation4], 128  }
 0x33d   :  { %553 = vsyncadd [#allocation4], 4294967168 }
 0x33e   :  { %338 = vsyncpa [#allocation3], 1 }
 0x33f   :  { %339 = vsyncpa [#allocation4], 1 }

</bundles_post_ra>
